<compile_context>
chip_gen: v7x
topology: tpu7x:2x2x1
jax: 0.10.0
libtpu: 0.0.40
codegen_flags: <defaults>
</compile_context>

<pallas_src>
import functools

import jax
import jax.numpy as jnp
from jax import lax
from jax.experimental import pallas as pl
from jax.experimental.pallas import tpu as pltpu

EPS = 1e-5


# ------------------------------- helpers --------------------------------------
@functools.lru_cache(maxsize=None)
def _vmem_limit_bytes():
  """Scoped VMEM limit derived from the chip (48 MiB on v7x, 96 MiB on v5e/v6e)."""
  cap = None
  try:
    cap = int(getattr(pltpu.get_tpu_info(), "vmem_capacity_bytes", 0)) or None
  except Exception:
    cap = None
  if cap is None:
    cap = 64 * 1024 * 1024          # conservative: assume v7x-sized VMEM
  return min((cap * 3) // 4, 96 * 1024 * 1024)


def _compiler_params():
  return pltpu.CompilerParams(
      dimension_semantics=("parallel",),
      vmem_limit_bytes=_vmem_limit_bytes())


def _pick_rows(total_rows, row_bytes, *, target_bytes=4 << 20, max_rows=1024):
  """Largest multiple-of-8 divisor of total_rows under the byte / row caps."""
  cap = max(8, min(total_rows, max_rows, target_bytes // max(row_bytes, 1)))
  t = cap - cap % 8
  while t >= 8:
    if total_rows % t == 0:
      return t
    t -= 8
  # TODO(synk): pad ragged row counts instead of falling back to one big tile.
  return total_rows


def _write_stats(stats_ref, o_f32):
  """Pack per-tile BN partials into one sublane-padded (1, 8, C) block."""
  c = o_f32.shape[-1]
  stats_ref[0, 0:1, :] = jnp.sum(o_f32, axis=0, keepdims=True)
  stats_ref[0, 1:2, :] = jnp.sum(o_f32 * o_f32, axis=0, keepdims=True)
  stats_ref[0, 2:8, :] = jnp.zeros((6, c), jnp.float32)


def _fold_bn(stats, count, gamma, beta):
  """Fold training-mode BN (global batch stats, biased var) into scale/bias."""
  s = jnp.sum(stats[:, 0, :], axis=0)
  q = jnp.sum(stats[:, 1, :], axis=0)
  mean = s / count
  var = jnp.maximum(q / count - mean * mean, 0.0)     # single-pass, biased
  scale = gamma.reshape(-1) * lax.rsqrt(var + EPS)
  bias = beta.reshape(-1) - mean * scale
  return scale.reshape(1, -1), bias.reshape(1, -1)


# --------------------- passes 1 & 3: 1x1 conv (+ BN partials) -----------------
def _conv1x1_kernel(x_ref, scale_ref, bias_ref, w_ref, o_ref, stats_ref, *,
                    prelude):
  """One row-chunk tile: (folded BN + ReLU) -> 1x1 conv -> packed BN partials."""
  x = x_ref[...].astype(jnp.float32)                 # (tr, Cin) f32
  if prelude:                                        # folded BN of previous stage
    x = jnp.maximum(x * scale_ref[...] + bias_ref[...], 0.0)
  o = jnp.dot(x.astype(w_ref.dtype), w_ref[...],
              preferred_element_type=jnp.float32)    # f32 MXU accumulation
  o_ref[...] = o.astype(o_ref.dtype)                 # compute-dtype store to HBM
  _write_stats(stats_ref, o)


def _conv1x1_pass(x2d, scale, bias, w, *, prelude, out_dtype):
  R, Cin = x2d.shape
  Cout = w.shape[1]
  tr = _pick_rows(R, 4 * (Cin + Cout))
  n = R // tr
  kernel = functools.partial(_conv1x1_kernel, prelude=prelude)
  return pl.pallas_call(
      kernel,
      grid=(n,),
      in_specs=[
          pl.BlockSpec((tr, Cin), lambda i: (i, 0)),
          pl.BlockSpec((1, Cin), lambda i: (0, 0)),
          pl.BlockSpec((1, Cin), lambda i: (0, 0)),
          pl.BlockSpec((Cin, Cout), lambda i: (0, 0)),
      ],
      out_specs=(
          pl.BlockSpec((tr, Cout), lambda i: (i, 0)),
          pl.BlockSpec((1, 8, Cout), lambda i: (i, 0, 0)),
      ),
      out_shape=(
          jax.ShapeDtypeStruct((R, Cout), out_dtype),
          jax.ShapeDtypeStruct((n, 8, Cout), jnp.float32),
      ),
      compiler_params=_compiler_params(),
  )(x2d, scale, bias, w)


# --------------- pass 2: 3x3 conv as nine K=Cw matmuls (+ BN partials) --------
def _conv3x3_kernel(o1_ref, scale_ref, bias_ref, w_ref, o2_ref, stats_ref,
                    pad_ref):
  """One image: folded BN1 + ReLU -> 3x3 conv (9 shifted matmuls) -> partials."""
  _, H, W, Cw = o1_ref.shape
  cdt = pad_ref.dtype

  a = jnp.maximum(o1_ref[0].astype(jnp.float32) * scale_ref[0] + bias_ref[0],
                  0.0)                               # (H, W, Cw) f32
  a = a.astype(cdt)

  # Zero-padded activation in VMEM scratch: zero only the halo ring, write the
  # interior once.
  zrow = jnp.zeros((1, W + 2, Cw), cdt)
  zcol = jnp.zeros((H, 1, Cw), cdt)
  pad_ref[0:1, :, :] = zrow
  pad_ref[H + 1:H + 2, :, :] = zrow
  pad_ref[1:H + 1, 0:1, :] = zcol
  pad_ref[1:H + 1, W + 1:W + 2, :] = zcol
  pad_ref[1:H + 1, 1:W + 1, :] = a
  padded = pad_ref[...]

  # Nine shifted-window matmuls with K=Cw, f32 accumulation.  No materializing
  # concat-im2col (which copied ~9x the activation volume through vld/vst).
  acc = jnp.zeros((H * W, Cw), jnp.float32)
  for kh in range(3):
    for kw in range(3):
      win = padded[kh:kh + H, kw:kw + W, :].reshape(H * W, Cw)
      acc = acc + jnp.dot(win, w_ref[kh * 3 + kw],
                          preferred_element_type=jnp.float32)

  o2_ref[0] = acc.astype(o2_ref.dtype)
  _write_stats(stats_ref, acc)


def _conv3x3_pass(o1, scale, bias, w2, N, H, W, *, compute_dtype, out_dtype):
  Cw = o1.shape[-1]
  o1_4d = o1.reshape(N, H, W, Cw)                    # free reshape
  w2_9 = w2.reshape(9, Cw, Cw).astype(compute_dtype)  # HWIO -> (tap, Cin, Cout)
  return pl.pallas_call(
      _conv3x3_kernel,
      grid=(N,),
      in_specs=[
          pl.BlockSpec((1, H, W, Cw), lambda i: (i, 0, 0, 0)),
          pl.BlockSpec((1, Cw), lambda i: (0, 0)),
          pl.BlockSpec((1, Cw), lambda i: (0, 0)),
          pl.BlockSpec((9, Cw, Cw), lambda i: (0, 0, 0)),
      ],
      out_specs=(
          pl.BlockSpec((1, H * W, Cw), lambda i: (i, 0, 0)),
          pl.BlockSpec((1, 8, Cw), lambda i: (i, 0, 0)),
      ),
      out_shape=(
          jax.ShapeDtypeStruct((N, H * W, Cw), out_dtype),
          jax.ShapeDtypeStruct((N, 8, Cw), jnp.float32),
      ),
      scratch_shapes=[
          pltpu.VMEM((H + 2, W + 2, Cw), compute_dtype),  # zero-padded activation
      ],
      compiler_params=_compiler_params(),
  )(o1_4d, scale, bias, w2_9)


# --------------- pass 4: bn3 fold + residual + ReLU (lane-dense) --------------
def _finalize_kernel(o3_ref, x_ref, scale_ref, bias_ref, out_ref):
  o3 = o3_ref[...].astype(jnp.float32)
  out_ref[...] = jnp.maximum(
      o3 * scale_ref[...] + bias_ref[...] + x_ref[...], 0.0)


def _finalize_pass(o3, x2d, scale, bias, N, H, W, C):
  # Lane-dense 2-D slabs (N*H, W*C): channel varies fastest so per-channel
  # scale/bias are tiled W times once in the wrapper.
  R, WC = N * H, W * C
  o3_2d = o3.reshape(R, WC)
  x_2d = x2d.reshape(R, WC)
  scale_t = jnp.tile(scale.reshape(-1), W).reshape(1, WC)
  bias_t = jnp.tile(bias.reshape(-1), W).reshape(1, WC)
  tr = _pick_rows(R, 12 * WC)                        # o3 + x + out per row
  out = pl.pallas_call(
      _finalize_kernel,
      grid=(R // tr,),
      in_specs=[
          pl.BlockSpec((tr, WC), lambda i: (i, 0)),
          pl.BlockSpec((tr, WC), lambda i: (i, 0)),
          pl.BlockSpec((1, WC), lambda i: (0, 0)),
          pl.BlockSpec((1, WC), lambda i: (0, 0)),
      ],
      out_specs=pl.BlockSpec((tr, WC), lambda i: (i, 0)),
      out_shape=jax.ShapeDtypeStruct((R, WC), jnp.float32),
      compiler_params=_compiler_params(),
  )(o3_2d, x_2d, scale_t, bias_t)
  return out.reshape(N, H, W, C)


# ------------------------------ public wrappers -------------------------------
def bottleneck_forward_nhwc(x_nhwc, params, compute_dtype=jnp.bfloat16):
  """Bottleneck forward on NHWC input (stride=1, groups=1, no downsample)."""
  (w1, g1, b1, w2, g2, b2, w3, g3, b3) = params
  N, H, W, Cin = x_nhwc.shape
  Cw = w1.shape[1]
  Cout = w3.shape[1]
  assert Cin == Cout, "identity residual requires inplanes == planes * expansion"
  R = N * H * W
  count = float(R)

  w1c = w1.astype(compute_dtype)
  w3c = w3.astype(compute_dtype)

  x2d = x_nhwc.astype(jnp.float32).reshape(R, Cin)   # free reshape

  ones_c = jnp.ones((1, Cin), jnp.float32)
  zeros_c = jnp.zeros((1, Cin), jnp.float32)

  # Pass 1: conv1 (1x1) + packed BN1 partials; o1 stored in compute dtype.
  o1, st1 = _conv1x1_pass(x2d, ones_c, zeros_c, w1c, prelude=False,
                          out_dtype=compute_dtype)
  sc1, bi1 = _fold_bn(st1, count, g1, b1)

  # Pass 2: folded bn1+relu -> conv2 (3x3, 9 shifted matmuls) + BN2 partials.
  o2, st2 = _conv3x3_pass(o1, sc1, bi1, w2, N, H, W,
                          compute_dtype=compute_dtype, out_dtype=compute_dtype)
  sc2, bi2 = _fold_bn(st2, count, g2, b2)

  # Pass 3: folded bn2+relu -> conv3 (1x1) + BN3 partials.
  o3, st3 = _conv1x1_pass(o2.reshape(R, Cw), sc2, bi2, w3c, prelude=True,
                          out_dtype=compute_dtype)
  sc3, bi3 = _fold_bn(st3, count, g3, b3)

  # Pass 4: folded bn3 + identity residual + relu (lane-dense elementwise).
  return _finalize_pass(o3, x2d, sc3, bi3, N, H, W, Cout)


def bottleneck_forward(x_nchw, params, compute_dtype=jnp.bfloat16):
  """NCHW wrapper matching the PyTorch module interface.

  NOTE: the two transposes below are full HBM round-trips outside the kernels;
  prefer bottleneck_forward_nhwc when the surrounding graph is channels-last.
  """
  x_nhwc = jnp.transpose(x_nchw, (0, 2, 3, 1))
  out = bottleneck_forward_nhwc(x_nhwc, params, compute_dtype=compute_dtype)
  return jnp.transpose(out, (0, 3, 1, 2))


# --------------------------- pure-JAX reference -------------------------------
def _ref_bn(x_nchw, gamma, beta):
  mean = jnp.mean(x_nchw, axis=(0, 2, 3), keepdims=True)
  var = jnp.mean((x_nchw - mean) ** 2, axis=(0, 2, 3), keepdims=True)
  g = gamma.reshape(1, -1, 1, 1)
  b = beta.reshape(1, -1, 1, 1)
  return (x_nchw - mean) * lax.rsqrt(var + EPS) * g + b


def bottleneck_reference(x, params):
  (w1, g1, b1, w2, g2, b2, w3, g3, b3) = params
  w1_oihw = jnp.transpose(w1, (1, 0))[:, :, None, None]      # (Cw, Cin, 1, 1)
  w2_oihw = jnp.transpose(w2, (3, 2, 0, 1))                   # (Cw, Cw, 3, 3)
  w3_oihw = jnp.transpose(w3, (1, 0))[:, :, None, None]       # (Cout, Cw, 1, 1)
  dn = ("NCHW", "OIHW", "NCHW")

  o = lax.conv_general_dilated(x, w1_oihw, (1, 1), "VALID", dimension_numbers=dn)
  o = jax.nn.relu(_ref_bn(o, g1, b1))
  o = lax.conv_general_dilated(o, w2_oihw, (1, 1), ((1, 1), (1, 1)),
                               dimension_numbers=dn)
  o = jax.nn.relu(_ref_bn(o, g2, b2))
  o = lax.conv_general_dilated(o, w3_oihw, (1, 1), "VALID", dimension_numbers=dn)
  o = _ref_bn(o, g3, b3)
  return jax.nn.relu(o + x)


# ------------------------------------ main ------------------------------------
if __name__ == "__main__":
  # Small shapes: batch=2, inplanes=16, planes=4 (=> width=4, out=16), 8x8 spatial.
  N, H, W = 2, 8, 8
  planes = 4
  expansion = 4
  inplanes = planes * expansion            # 16 -> identity add needs no downsample
  width = int(planes * (64 / 64.0)) * 1    # groups=1, base_width=64 -> 4
  cout = planes * expansion                # 16

  key = jax.random.PRNGKey(0)
  kx, k1, k2, k3 = jax.random.split(key, 4)

  x = jax.random.normal(kx, (N, inplanes, H, W), dtype=jnp.float32)

  # Conv weights in matmul-ready layouts:
  #   w1: (Cin, Cw) [conv1x1],  w2: (3, 3, Cw, Cw) HWIO,  w3: (Cw, Cout)
  w1 = jax.random.normal(k1, (inplanes, width), dtype=jnp.float32) * 0.1
  w2 = jax.random.normal(k2, (3, 3, width, width), dtype=jnp.float32) * 0.1
  w3 = jax.random.normal(k3, (width, cout), dtype=jnp.float32) * 0.1

  # BatchNorm affine params: PyTorch default init (gamma=1, beta=0).
  g1, b1 = jnp.ones((width,), jnp.float32), jnp.zeros((width,), jnp.float32)
  g2, b2 = jnp.ones((width,), jnp.float32), jnp.zeros((width,), jnp.float32)
  g3, b3 = jnp.ones((cout,), jnp.float32), jnp.zeros((cout,), jnp.float32)

  params = (w1, g1, b1, w2, g2, b2, w3, g3, b3)

  ref = jax.block_until_ready(bottleneck_reference(x, params))

  # Strict check: f32 path (f32 matmuls + f32 intermediates) matches tightly.
  out_f32 = jax.block_until_ready(
      bottleneck_forward(x, params, compute_dtype=jnp.float32))
  assert out_f32.shape == (N, cout, H, W), out_f32.shape
  err_f32 = float(jnp.max(jnp.abs(out_f32 - ref)))
  assert jnp.allclose(out_f32, ref, rtol=1e-4, atol=1e-4), err_f32

  # Fast path: bf16 MXU operands *and* bf16 intermediate activations with f32
  # accumulation / BN statistics (looser tolerance; correctness is gated by the
  # f32 path above).
  out_bf16 = jax.block_until_ready(
      bottleneck_forward(x, params, compute_dtype=jnp.bfloat16))
  err_bf16 = float(jnp.max(jnp.abs(out_bf16 - ref)))
  assert jnp.allclose(out_bf16, ref, rtol=1e-1, atol=1e-1), err_bf16

  print("KERNEL_OK")
</pallas_src>

<mosaic_0001>
module attributes {stable_mosaic.version = 11 : i64} {
  func.func @_conv1x1_kernel(%arg0: i32, %arg1: memref<128x16xf32, #tpu.memory_space<vmem>>, %arg2: memref<1x16xf32, #tpu.memory_space<vmem>>, %arg3: memref<1x16xf32, #tpu.memory_space<vmem>>, %arg4: memref<16x4xf32, #tpu.memory_space<vmem>>, %arg5: memref<128x4xf32, #tpu.memory_space<vmem>>, %arg6: memref<1x8x4xf32, #tpu.memory_space<vmem>>) attributes {dimension_semantics = [#tpu.dimension_semantics<parallel>], iteration_bounds = array<i64: 1>, scalar_prefetch = 0 : i64, scratch_operands = 0 : i64, tpu.core_type = #tpu.core_type<tc>, window_params = [{transform_indices = @transform_0, window_bounds = array<i64: 128, 16>}, {pipeline_mode = #tpu.pipeline_mode<synchronous>, transform_indices = @transform_1, window_bounds = array<i64: 1, 16>}, {pipeline_mode = #tpu.pipeline_mode<synchronous>, transform_indices = @transform_2, window_bounds = array<i64: 1, 16>}, {pipeline_mode = #tpu.pipeline_mode<synchronous>, transform_indices = @transform_3, window_bounds = array<i64: 16, 4>}, {transform_indices = @transform_4, window_bounds = array<i64: 128, 4>}, {transform_indices = @transform_5, window_bounds = array<i64: 1, 8, 4>}]} {
    %c0 = arith.constant 0 : index
    %c0_0 = arith.constant 0 : index
    %0 = vector.load %arg1[%c0, %c0_0] : memref<128x16xf32, #tpu.memory_space<vmem>>, vector<128x16xf32>
    %c0_1 = arith.constant 0 : index
    %c0_2 = arith.constant 0 : index
    %1 = vector.load %arg4[%c0_1, %c0_2] : memref<16x4xf32, #tpu.memory_space<vmem>>, vector<16x4xf32>
    %cst = arith.constant dense<0.000000e+00> : vector<128x4xf32>
    %2 = tpu.matmul %0, %1, %cst {dimension_numbers = #tpu.dot_dimension_numbers<[1], [0], [0], [1], [0, 0, 1, 1], [], []>} : vector<128x16xf32>, vector<16x4xf32>, vector<128x4xf32> -> vector<128x4xf32>
    %c0_3 = arith.constant 0 : index
    %c0_4 = arith.constant 0 : index
    %3 = vector.load %arg5[%c0_3, %c0_4] : memref<128x4xf32, #tpu.memory_space<vmem>>, vector<128x4xf32>
    tpu.vector_store %arg5[%c0_3, %c0_4], %2 {strides = array<i32>} : memref<128x4xf32, #tpu.memory_space<vmem>>, vector<128x4xf32>,
    %cst_5 = arith.constant dense<0.000000e+00> : vector<4xf32>
    %4 = vector.multi_reduction <add>, %2, %cst_5 [0] : vector<128x4xf32> to vector<4xf32>
    %5 = vector.shape_cast %4 : vector<4xf32> to vector<1x4xf32>
    %c0_6 = arith.constant 0 : index
    %c0_7 = arith.constant 0 : index
    %c0_8 = arith.constant 0 : index
    %6 = vector.load %arg6[%c0_6, %c0_7, %c0_8] : memref<1x8x4xf32, #tpu.memory_space<vmem>>, vector<1x1x4xf32>
    %7 = vector.shape_cast %6 : vector<1x1x4xf32> to vector<1x4xf32>
    %8 = vector.shape_cast %5 : vector<1x4xf32> to vector<1x1x4xf32>
    tpu.vector_store %arg6[%c0_6, %c0_7, %c0_8], %8 {strides = array<i32>} : memref<1x8x4xf32, #tpu.memory_space<vmem>>, vector<1x1x4xf32>,
    %9 = arith.mulf %2, %2 : vector<128x4xf32>
    %cst_9 = arith.constant dense<0.000000e+00> : vector<4xf32>
    %10 = vector.multi_reduction <add>, %9, %cst_9 [0] : vector<128x4xf32> to vector<4xf32>
    %11 = vector.shape_cast %10 : vector<4xf32> to vector<1x4xf32>
    %c0_10 = arith.constant 0 : index
    %c1 = arith.constant 1 : index
    %c0_11 = arith.constant 0 : index
    %12 = vector.load %arg6[%c0_10, %c1, %c0_11] : memref<1x8x4xf32, #tpu.memory_space<vmem>>, vector<1x1x4xf32>
    %13 = vector.shape_cast %12 : vector<1x1x4xf32> to vector<1x4xf32>
    %14 = vector.shape_cast %11 : vector<1x4xf32> to vector<1x1x4xf32>
    tpu.vector_store %arg6[%c0_10, %c1, %c0_11], %14 {strides = array<i32>} : memref<1x8x4xf32, #tpu.memory_space<vmem>>, vector<1x1x4xf32>,
    %cst_12 = arith.constant 0.000000e+00 : f32
    %15 = vector.broadcast %cst_12 : f32 to vector<6x4xf32>
    %c0_13 = arith.constant 0 : index
    %c2 = arith.constant 2 : index
    %c0_14 = arith.constant 0 : index
    %16 = vector.load %arg6[%c0_13, %c2, %c0_14] : memref<1x8x4xf32, #tpu.memory_space<vmem>>, vector<1x6x4xf32>
    %17 = vector.shape_cast %16 : vector<1x6x4xf32> to vector<6x4xf32>
    %18 = vector.shape_cast %15 : vector<6x4xf32> to vector<1x6x4xf32>
    tpu.vector_store %arg6[%c0_13, %c2, %c0_14], %18 {strides = array<i32>} : memref<1x8x4xf32, #tpu.memory_space<vmem>>, vector<1x6x4xf32>,
    return
  }
  func.func @transform_0(%arg0: i32) -> (i32, i32) {
    %c0_i32 = arith.constant 0 : i32
    %c0_i32_0 = arith.constant 0 : i32
    return %arg0, %c0_i32 : i32, i32
  }
  func.func @transform_1(%arg0: i32) -> (i32, i32) {
    %c0_i32 = arith.constant 0 : i32
    %c0_i32_0 = arith.constant 0 : i32
    %c0_i32_1 = arith.constant 0 : i32
    return %c0_i32, %c0_i32_0 : i32, i32
  }
  func.func @transform_2(%arg0: i32) -> (i32, i32) {
    %c0_i32 = arith.constant 0 : i32
    %c0_i32_0 = arith.constant 0 : i32
    %c0_i32_1 = arith.constant 0 : i32
    return %c0_i32, %c0_i32_0 : i32, i32
  }
  func.func @transform_3(%arg0: i32) -> (i32, i32) {
    %c0_i32 = arith.constant 0 : i32
    %c0_i32_0 = arith.constant 0 : i32
    %c0_i32_1 = arith.constant 0 : i32
    return %c0_i32, %c0_i32_0 : i32, i32
  }
  func.func @transform_4(%arg0: i32) -> (i32, i32) {
    %c0_i32 = arith.constant 0 : i32
    %c0_i32_0 = arith.constant 0 : i32
    return %arg0, %c0_i32 : i32, i32
  }
  func.func @transform_5(%arg0: i32) -> (i32, i32, i32) {
    %c0_i32 = arith.constant 0 : i32
    %c0_i32_0 = arith.constant 0 : i32
    %c0_i32_1 = arith.constant 0 : i32
    return %arg0, %c0_i32, %c0_i32_0 : i32, i32, i32
  }
}

</mosaic_0001>

<bundles_post_ra>
// kernel: tpu_custom_call.1
= control target key start
LH: loop header
LB: loop body
LE: loop exit
PB: predicated region body
PF: predicated region fallthrough
CT: control target
= control target key end

     0   :  { %vm37_vm0 = vcmask 130048   ;;  %vm341_vm1 = vcmask 29696   ;;  %v420_v19 = vmov 0.0   ;;  %vm231_vm2 = vcmask 31744   ;;  %s644_s1 = inlined_call_operand.vmem [shape: f32[1,16], index: 1, kind: input, shape index: {}]   ;;  %s645_s2 = inlined_call_operand.vmem [shape: f32[1,16], index: 2, kind: input, shape index: {}]   ;;  %s646_s3 = inlined_call_operand.vmem [shape: f32[16,4], index: 3, kind: input, shape index: {}]   ;;  %s647_s0 = inlined_call_operand.vmem [shape: f32[128,16], index: 0, kind: input, shape index: {}]   ;;  %s648_s5 = inlined_call_operand.vmem [shape: f32[1,8,4], index: 5, kind: output, shape index: {1}]   ;;  %s649_s4 = inlined_call_operand.vmem [shape: f32[128,4], index: 4, kind: output, shape index: {0}]  }
   0x1   :  { %v35_v0 = vld [vmem:[%s646_s3] sm:$0xff]  ;;  %v36_v1 = vld [vmem:[%s646_s3 + $0x8] sm:$0xff]  ;;  %v21_v7 = vld [vmem:[%s647_s0 + $0x10] sm:$0xff]  ;;  %342 = vst.msk [vmem:[%s648_s5 + $0x2] sm:$0x3f] %vm341_vm1, %v420_v19  ;;  %vm285_vm3 = vcmask 24576  }
   0x2   :  { %v19_v2 = vld [vmem:[%s647_s0] sm:$0xff]  ;;  %v413_v3 = vpack.c.bf16 %v36_v1, %v35_v0  ;;  %v20_v5 = vld [vmem:[%s647_s0 + $0x8] sm:$0xff]  ;;  %v29_v8 = vld [vmem:[%s647_s0 + $0x50] sm:$0xff] }
   0x3   :  { %389 = vmatprep.mubr.msk.f32.mxu0 %vm37_vm0, %v19_v2  ;;  %v27_v4 = vld [vmem:[%s647_s0 + $0x40] sm:$0xff]  ;;  %v28_v6 = vld [vmem:[%s647_s0 + $0x48] sm:$0xff]  ;;  %v22_v9 = vld [vmem:[%s647_s0 + $0x18] sm:$0xff] }
   0x4   :  { %414 = vmatprep.subr.bf16.mxu0 %v413_v3  ;;  %417 = vmatprep.subr.bf16.mxu1 %v413_v3  ;;  %v30_v10 = vld [vmem:[%s647_s0 + $0x58] sm:$0xff]  ;;  %v23_v11 = vld [vmem:[%s647_s0 + $0x20] sm:$0xff]  ;;  %v24_v13 = vld [vmem:[%s647_s0 + $0x28] sm:$0xff] }
   0x5   :  { %416 = vmatpush3.bf16.msra.mxu0 %v413_v3  ;;  %418 = vmatpush3.bf16.msra.mxu1 %v413_v3  ;;  %v31_v12 = vld [vmem:[%s647_s0 + $0x60] sm:$0xff]  ;;  %v32_v14 = vld [vmem:[%s647_s0 + $0x68] sm:$0xff]  ;;  %v25_v15 = vld [vmem:[%s647_s0 + $0x30] sm:$0xff] }
   0x6   :  { %401 = vmatprep.mubr.msk.f32.mxu1 %vm37_vm0, %v27_v4  ;;  %v33_v16 = vld [vmem:[%s647_s0 + $0x70] sm:$0xff]  ;;  %v26_v17 = vld [vmem:[%s647_s0 + $0x38] sm:$0xff] }
   0x7   :  { %v34_v18 = vld [vmem:[%s647_s0 + $0x78] sm:$0xff] }
   0x8   :  { %390 = vmatmul.mubr.msk.f32.vlgmr.msra.gmra.mrb[0].mxu0 %vm37_vm0, %v20_v5  ;;  %402 = vmatmul.mubr.msk.f32.vlgmr.msra.gmra.mrb[0].mxu1 %vm37_vm0, %v28_v6 }
   0x9   :  { %392 = vmatprep.mubr.msk.f32.mxu0 %vm37_vm0, %v21_v7  ;;  %404 = vmatprep.mubr.msk.f32.mxu1 %vm37_vm0, %v29_v8 }
   0xc   :  { %393 = vmatmul.mubr.msk.f32.gmra.mrb[2].mxu0 %vm37_vm0, %v22_v9  ;;  %405 = vmatmul.mubr.msk.f32.gmra.mrb[2].mxu1 %vm37_vm0, %v30_v10 }
   0xd   :  { %395 = vmatprep.mubr.msk.f32.mxu0 %vm37_vm0, %v23_v11  ;;  %407 = vmatprep.mubr.msk.f32.mxu1 %vm37_vm0, %v31_v12 }
  0x10   :  { %396 = vmatmul.mubr.msk.f32.gmra.mrb[4].mxu0 %vm37_vm0, %v24_v13  ;;  %408 = vmatmul.mubr.msk.f32.gmra.mrb[4].mxu1 %vm37_vm0, %v32_v14 }
  0x11   :  { %398 = vmatprep.mubr.msk.f32.mxu0 %vm37_vm0, %v25_v15  ;;  %410 = vmatprep.mubr.msk.f32.mxu1 %vm37_vm0, %v33_v16 }
  0x14   :  { %399 = vmatmul.mubr.msk.f32.gmra.mrb[6].mxu0 %vm37_vm0, %v26_v17  ;;  %411 = vmatmul.mubr.msk.f32.gmra.mrb[6].mxu1 %vm37_vm0, %v34_v18 }
  0xdb   :  { %v391_v20 = vpop.f32.mrb[0].mxu0  ;;  %v524_v21 = vpop.f32.mrb[0].mxu1 }
  0xdc   :  { %233 = vst.msk [vmem:[%s649_s4 + $0x8] sm:$0xff] %vm231_vm2, %v391_v20  ;;  %v249_v22 = vsel %vm231_vm2, %v391_v20, 0.0  ;;  %v288_v23 = vmul.f32 %v391_v20, %v391_v20  ;;  %v152_v24 = vpop.f32.mrb[1].mxu0  ;;  %241 = vst.msk [vmem:[%s649_s4 + $0x48] sm:$0xff] %vm231_vm2, %v524_v21  ;;  %v192_v25 = vpop.f32.mrb[1].mxu1  ;;  %v296_v11 = vmul.f32 %v524_v21, %v524_v21  ;;  %v265_v16 = vsel %vm231_vm2, %v524_v21, 0.0 }
  0xdd   :  { %232 = vst.msk [vmem:[%s649_s4] sm:$0xff] %vm231_vm2, %v152_v24  ;;  %v248_v26 = vsel %vm231_vm2, %v152_v24, 0.0  ;;  %v287_v27 = vmul.f32 %v152_v24, %v152_v24  ;;  %240 = vst.msk [vmem:[%s649_s4 + $0x40] sm:$0xff] %vm231_vm2, %v192_v25  ;;  %v295_v61 = vmul.f32 %v192_v25, %v192_v25  ;;  %v263_v7 = vsel %vm231_vm2, %v192_v25, 0.0 }
  0xde   :  { %v304_v28 = vsel %vm231_vm2, %v288_v23, 0.0  ;;  %v250_v29 = vadd.f32 %v249_v22, %v248_v26  ;;  %v320_v20 = vsel %vm231_vm2, %v296_v11, 0.0 }
  0xdf   :  { %v303_v30 = vsel %vm231_vm2, %v287_v27, 0.0  ;;  %v394_v31 = vpop.f32.mrb[2].mxu0  ;;  %v547_v32 = vpop.f32.mrb[2].mxu1  ;;  %v318_v12 = vsel %vm231_vm2, %v295_v61, 0.0 }
  0xe0   :  { %v305_v33 = vadd.f32 %v304_v28, %v303_v30  ;;  %235 = vst.msk [vmem:[%s649_s4 + $0x18] sm:$0xff] %vm231_vm2, %v394_v31  ;;  %v162_v34 = vpop.f32.mrb[3].mxu0  ;;  %243 = vst.msk [vmem:[%s649_s4 + $0x58] sm:$0xff] %vm231_vm2, %v547_v32  ;;  %v202_v35 = vpop.f32.mrb[3].mxu1  ;;  %v290_v36 = vmul.f32 %v394_v31, %v394_v31  ;;  %v253_v40 = vsel %vm231_vm2, %v394_v31, 0.0  ;;  %v298_v22 = vmul.f32 %v547_v32, %v547_v32 }
  0xe1   :  { %234 = vst.msk [vmem:[%s649_s4 + $0x10] sm:$0xff] %vm231_vm2, %v162_v34  ;;  %v251_v37 = vsel %vm231_vm2, %v162_v34, 0.0  ;;  %v289_v38 = vmul.f32 %v162_v34, %v162_v34  ;;  %242 = vst.msk [vmem:[%s649_s4 + $0x50] sm:$0xff] %vm231_vm2, %v202_v35  ;;  %v297_v13 = vmul.f32 %v202_v35, %v202_v35  ;;  %v267_v17 = vsel %vm231_vm2, %v202_v35, 0.0 }
  0xe2   :  { %v252_v39 = vadd.f32 %v251_v37, %v250_v29  ;;  %v308_v48 = vsel %vm231_vm2, %v290_v36, 0.0  ;;  %v269_v27 = vsel %vm231_vm2, %v547_v32, 0.0  ;;  %v324_v30 = vsel %vm231_vm2, %v298_v22, 0.0 }
  0xe3   :  { %v306_v41 = vsel %vm231_vm2, %v289_v38, 0.0  ;;  %v397_v42 = vpop.f32.mrb[4].mxu0  ;;  %v569_v43 = vpop.f32.mrb[4].mxu1  ;;  %v322_v23 = vsel %vm231_vm2, %v297_v13, 0.0 }
  0xe4   :  { %v307_v44 = vadd.f32 %v306_v41, %v305_v33  ;;  %237 = vst.msk [vmem:[%s649_s4 + $0x28] sm:$0xff] %vm231_vm2, %v397_v42  ;;  %v172_v45 = vpop.f32.mrb[5].mxu0  ;;  %v254_v46 = vadd.f32 %v253_v40, %v252_v39  ;;  %245 = vst.msk [vmem:[%s649_s4 + $0x68] sm:$0xff] %vm231_vm2, %v569_v43  ;;  %v212_v47 = vpop.f32.mrb[5].mxu1  ;;  %v292_v49 = vmul.f32 %v397_v42, %v397_v42  ;;  %v257_v54 = vsel %vm231_vm2, %v397_v42, 0.0 }
  0xe5   :  { %236 = vst.msk [vmem:[%s649_s4 + $0x20] sm:$0xff] %vm231_vm2, %v172_v45  ;;  %v255_v50 = vsel %vm231_vm2, %v172_v45, 0.0  ;;  %v291_v51 = vmul.f32 %v172_v45, %v172_v45  ;;  %244 = vst.msk [vmem:[%s649_s4 + $0x60] sm:$0xff] %vm231_vm2, %v212_v47  ;;  %v299_v24 = vmul.f32 %v212_v47, %v212_v47  ;;  %v271_v28 = vsel %vm231_vm2, %v212_v47, 0.0 }
  0xe6   :  { %v256_v52 = vadd.f32 %v255_v50, %v254_v46  ;;  %v309_v53 = vadd.f32 %v308_v48, %v307_v44  ;;  %v312_v63 = vsel %vm231_vm2, %v292_v49, 0.0  ;;  %v300_v31 = vmul.f32 %v569_v43, %v569_v43 }
  0xe7   :  { %v310_v55 = vsel %vm231_vm2, %v291_v51, 0.0  ;;  %v400_v56 = vpop.f32.mrb[6].mxu0  ;;  %v412_v57 = vpop.f32.mrb[6].mxu1  ;;  %v326_v33 = vsel %vm231_vm2, %v299_v24, 0.0  ;;  %v273_v37 = vsel %vm231_vm2, %v569_v43, 0.0 }
  0xe8   :  { %v311_v58 = vadd.f32 %v310_v55, %v309_v53  ;;  %239 = vst.msk [vmem:[%s649_s4 + $0x38] sm:$0xff] %vm231_vm2, %v400_v56  ;;  %v182_v59 = vpop.f32.mrb[7].mxu0  ;;  %v258_v60 = vadd.f32 %v257_v54, %v256_v52  ;;  %247 = vst.msk [vmem:[%s649_s4 + $0x78] sm:$0xff] %vm231_vm2, %v412_v57  ;;  %v222_v62 = vpop.f32.mrb[7].mxu1  ;;  %v294_v0 = vmul.f32 %v400_v56, %v400_v56  ;;  %v261_v5 = vsel %vm231_vm2, %v400_v56, 0.0 }
  0xe9   :  { %238 = vst.msk [vmem:[%s649_s4 + $0x30] sm:$0xff] %vm231_vm2, %v182_v59  ;;  %v259_v1 = vsel %vm231_vm2, %v182_v59, 0.0  ;;  %v293_v2 = vmul.f32 %v182_v59, %v182_v59  ;;  %246 = vst.msk [vmem:[%s649_s4 + $0x70] sm:$0xff] %vm231_vm2, %v222_v62  ;;  %v301_v34 = vmul.f32 %v222_v62, %v222_v62  ;;  %v275_v38 = vsel %vm231_vm2, %v222_v62, 0.0 }
  0xea   :  { %v260_v3 = vadd.f32 %v259_v1, %v258_v60  ;;  %v313_v4 = vadd.f32 %v312_v63, %v311_v58  ;;  %v316_v10 = vsel %vm231_vm2, %v294_v0, 0.0  ;;  %v328_v40 = vsel %vm231_vm2, %v300_v31, 0.0 }
  0xeb   :  { %v314_v6 = vsel %vm231_vm2, %v293_v2, 0.0  ;;  %v302_v41 = vmul.f32 %v412_v57, %v412_v57  ;;  %v330_v42 = vsel %vm231_vm2, %v301_v34, 0.0  ;;  %v277_v46 = vsel %vm231_vm2, %v412_v57, 0.0 }
  0xec   :  { %v262_v8 = vadd.f32 %v261_v5, %v260_v3  ;;  %v315_v9 = vadd.f32 %v314_v6, %v313_v4 }
  0xed   :  { %v332_v49 = vsel %vm231_vm2, %v302_v41, 0.0 }
  0xee   :  { %v317_v14 = vadd.f32 %v316_v10, %v315_v9  ;;  %v264_v15 = vadd.f32 %v263_v7, %v262_v8 }
  0xf0   :  { %v319_v18 = vadd.f32 %v318_v12, %v317_v14  ;;  %v266_v19 = vadd.f32 %v265_v16, %v264_v15 }
  0xf2   :  { %v268_v25 = vadd.f32 %v267_v17, %v266_v19  ;;  %v321_v26 = vadd.f32 %v320_v20, %v319_v18 }
  0xf4   :  { %v323_v21 = vadd.f32 %v322_v23, %v321_v26  ;;  %v270_v29 = vadd.f32 %v269_v27, %v268_v25 }
  0xf6   :  { %v272_v35 = vadd.f32 %v271_v28, %v270_v29  ;;  %v325_v36 = vadd.f32 %v324_v30, %v323_v21 }
  0xf8   :  { %v327_v32 = vadd.f32 %v326_v33, %v325_v36  ;;  %v274_v39 = vadd.f32 %v273_v37, %v272_v35 }
  0xfa   :  { %v276_v44 = vadd.f32 %v275_v38, %v274_v39  ;;  %v329_v45 = vadd.f32 %v328_v40, %v327_v32 }
  0xfc   :  { %v278_v47 = vadd.f32 %v277_v46, %v276_v44  ;;  %v331_v48 = vadd.f32 %v330_v42, %v329_v45 }
  0xfe   :  { %v279_v50 = vrot.slane %v278_v47, 4  ;;  %v333_v51 = vadd.f32 %v332_v49, %v331_v48 }
 0x100   :  { %v280_v43 = vadd.f32 %v279_v50, %v278_v47  ;;  %v334_v52 = vrot.slane %v333_v51, 4 }
 0x102   :  { %v281_v53 = vrot.slane %v280_v43, 2  ;;  %v335_v54 = vadd.f32 %v334_v52, %v333_v51 }
 0x104   :  { %v282_v55 = vadd.f32 %v281_v53, %v280_v43  ;;  %v336_v56 = vrot.slane %v335_v54, 2 }
 0x106   :  { %v283_v58 = vrot.slane %v282_v55, 1  ;;  %v337_v59 = vadd.f32 %v336_v56, %v335_v54 }
 0x108   :  { %v284_v60 = vadd.f32 %v283_v58, %v282_v55  ;;  %v338_v61 = vrot.slane %v337_v59, 1 }
 0x10a   :  { %286 = vst.msk [vmem:[%s648_s5] sm:$0x1] %vm285_vm3, %v284_v60  ;;  %v339_v57 = vadd.f32 %v338_v61, %v337_v59 }
 0x10c   :  { %340 = vst.msk [vmem:[%s648_s5 + $0x1] sm:$0x1] %vm285_vm3, %v339_v57 }

</bundles_post_ra>
